<compile_context>
chip_gen: v6e
topology: v6e:2x2x1
jax: 0.10.0
libtpu: 0.0.40
codegen_flags: <defaults>
</compile_context>

<pallas_src>
import numpy as np
import jax
import jax.numpy as jnp
from jax import lax
from jax.experimental import pallas as pl
from jax.experimental.pallas import tpu as pltpu


def cconv_transpose2d(x, w_real, w_imag, b_real, b_imag,
                      stride, padding, out_padding, use_bf16=False):
    """x: (N, Cin, H, W, 2) f32, w_*: (Cin, Cout, K, K) -> (N, Cout, Hout, Wout, 2)."""
    N, Cin, H, W, _ = x.shape
    _, Cout, K, _ = w_real.shape
    s, p, op = int(stride), int(padding), int(out_padding)
    Hout = (H - 1) * s - 2 * p + K + op
    Wout = (W - 1) * s - 2 * p + K + op
    Cin2, Cout2 = 2 * Cin, 2 * Cout

    # ---------------- static stride-group geometry --------------------------
    # out[oh] = sum_{kh: kh ≡ (oh+p) (mod s), ih=(oh+p-kh)/s in [0,H)} x[ih]*w[kh]
    # phase r = oh mod s:  kh = rp[r] + m*s,  ih = q + dd[r] - m  (oh = q*s+r),
    # with rp[r]=(r+p)%s, dd[r]=(r+p)//s.  Out-of-range ih reads padded zeros.
    Km = -(-K // s)                    # max taps per phase per spatial dim
    HQ = -(-Hout // s)                 # uniform per-phase output rows (crop later)
    WQ = -(-Wout // s)
    L = HQ * WQ                        # per-image pixel count of kernel output
    s2 = s * s

    rp = [(r + p) % s for r in range(s)]
    dd = [(r + p) // s for r in range(s)]
    d_min, d_max = min(dd), max(dd)

    PLh = max(0, (Km - 1) - d_min)
    PRh = max(0, (HQ - 1 + d_max) - (H - 1))
    PLw = max(0, (Km - 1) - d_min)
    PRw = max(0, (WQ - 1 + d_max) - (W - 1))
    Hp, Wp = H + PLh + PRh, W + PLw + PRw

    # valid taps per phase: (row_start, col_start, kh, kw), all static ints
    phase_taps = []
    for rh in range(s):
        for rw in range(s):
            taps = []
            for m1 in range(Km):
                kh = rp[rh] + m1 * s
                if kh >= K:
                    continue
                for m2 in range(Km):
                    kw = rp[rw] + m2 * s
                    if kw >= K:
                        continue
                    taps.append((PLh + dd[rh] - m1, PLw + dd[rw] - m2, kh, kw))
            phase_taps.append(taps)

    # UNION of distinct window shifts used by any phase (shared im2col slab)
    union_shifts = sorted({(a, b) for taps in phase_taps for (a, b, _, _) in taps})
    nU = len(union_shifts)
    R = nU * Cin2                      # contraction dim of the fused matmul
    M = s2 * Cout2                     # fused output rows (all phases stacked)

    # ---------------- complex-combined operands ------------------------------
    # compact input, channels stacked [real | imag], small edge padding only
    xc = jnp.concatenate([x[..., 0], x[..., 1]], axis=1)          # (N, Cin2, H, W)
    xp = jnp.pad(xc, ((0, 0), (0, 0), (PLh, PRh), (PLw, PRw)))    # (N, Cin2, Hp, Wp)

    # block-structured complex weight: rows = [real_in; imag_in],
    # cols = [real_out | imag_out]
    wc_top = jnp.concatenate([w_real, w_imag], axis=1)            # real-in rows
    wc_bot = jnp.concatenate([-w_imag, w_real], axis=1)           # imag-in rows
    wc = jnp.concatenate([wc_top, wc_bot], axis=0)                # (Cin2, Cout2, K, K)

    # fused per-phase weights stacked along M; zeros where a phase does not use
    # a given union shift  ->  (M, R)
    zero_blk = jnp.zeros((Cout2, Cin2), wc.dtype)
    rows = []
    for ph in range(s2):
        tap_by_shift = {(a, b): (kh, kw) for (a, b, kh, kw) in phase_taps[ph]}
        blocks = []
        for sh in union_shifts:
            if sh in tap_by_shift:
                kh, kw = tap_by_shift[sh]
                blocks.append(jnp.transpose(wc[:, :, kh, kw]))    # (Cout2, Cin2)
            else:
                blocks.append(zero_blk)
        rows.append(jnp.concatenate(blocks, axis=1))
    w_stacked = jnp.concatenate(rows, axis=0)                     # (M, R)

    bc = jnp.concatenate([b_real - b_imag, b_real + b_imag])      # (Cout2,)
    b_stacked = jnp.tile(bc, (s2,)).reshape(M, 1)                 # (M, 1)

    # ------------- wrapper-side im2col over the shift UNION ------------------
    # (pure layout plumbing; removes all masked slice/reshape work from kernel)
    L_pad = -(-L // 128) * 128
    wins = [xp[:, :, a:a + HQ, b:b + WQ].reshape(N, Cin2, L)
            for (a, b) in union_shifts]
    patch = jnp.concatenate(wins, axis=1)                         # (N, R, L)
    if L_pad != L:
        patch = jnp.pad(patch, ((0, 0), (0, 0), (0, L_pad - L)))

    compute_dtype = jnp.bfloat16 if use_bf16 else jnp.float32
    itemsize = 2 if use_bf16 else 4

    # ---------------- batch blocking (lanes = B_blk * L_pad) -----------------
    B_blk = 1
    for bb in (8, 4, 2):
        per_step = 2 * bb * L_pad * (R * itemsize + M * 4)
        if N % bb == 0 and N // bb >= 2 and per_step <= (40 << 20):
            B_blk = bb
            break
    NB = N // B_blk
    LB = B_blk * L_pad
    patch = patch.reshape(NB, B_blk, R, L_pad)
    patch = jnp.transpose(patch, (0, 2, 1, 3)).reshape(NB, R, LB)

    patch = patch.astype(compute_dtype)
    w_stacked = w_stacked.astype(compute_dtype)

    # ---------------- the Pallas kernel --------------------------------------
    def kernel(p_ref, w_ref, b_ref, o_ref):
        # p_ref: (1, R, LB)  union-shift im2col slab, one batch block
        # w_ref: (M, R)      fused phase-stacked complex weight
        # b_ref: (M, 1)      complex-combined bias per phase-stacked row
        # o_ref: (1, M, LB)  lane-dense output (all phases, whole batch block)
        acc = jnp.dot(w_ref[...], p_ref[0],
                      preferred_element_type=jnp.float32)
        o_ref[0] = (acc + b_ref[...]).astype(o_ref.dtype)

    # VMEM budget: double-buffered patch/output blocks + small constant blocks.
    p_blk = R * LB * itemsize
    o_blk = M * LB * 4
    w_blk = M * R * itemsize + M * 4
    need = 2 * (p_blk + o_blk + w_blk) + (4 << 20)
    try:
        cap = int(pltpu.get_tpu_info().vmem_capacity_bytes)
    except Exception:
        cap = 64 << 20                 # conservative (v7x per-TensorCore)
    vmem_limit = int(min(max(need, 16 << 20), int(0.85 * cap)))

    out = pl.pallas_call(
        kernel,
        out_shape=jax.ShapeDtypeStruct((NB, M, LB), jnp.float32),
        grid=(NB,),
        in_specs=[
            pl.BlockSpec((1, R, LB), lambda n: (n, 0, 0)),
            pl.BlockSpec((M, R), lambda n: (0, 0)),
            pl.BlockSpec((M, 1), lambda n: (0, 0)),
        ],
        out_specs=pl.BlockSpec((1, M, LB), lambda n: (n, 0, 0)),
        compiler_params=pltpu.CompilerParams(
            dimension_semantics=("parallel",),
            vmem_limit_bytes=vmem_limit),
    )(patch, w_stacked, b_stacked)

    # ------------- interleave phases back (layout plumbing only) -------------
    out = out.reshape(NB, s2, Cout2, B_blk, L_pad)[..., :L]
    out = jnp.transpose(out, (0, 3, 1, 2, 4)).reshape(N, s, s, Cout2, HQ, WQ)
    out = jnp.transpose(out, (0, 3, 4, 1, 5, 2))          # (N, Cout2, HQ, s, WQ, s)
    out = out.reshape(N, Cout2, HQ * s, WQ * s)[:, :, :Hout, :Wout]
    return jnp.stack([out[:, :Cout], out[:, Cout:]], axis=-1)


if __name__ == "__main__":
    N, Cin, Cout, H, W = 2, 4, 4, 16, 16
    K, stride, padding, out_padding = 3, 2, 1, 1

    key = jax.random.PRNGKey(0)
    k1, k2, k3, k4, k5 = jax.random.split(key, 5)

    # xavier_uniform-style init for ConvTranspose2d weights (Cin, Cout, K, K)
    bound = float(np.sqrt(6.0 / ((Cin + Cout) * K * K)))
    w_real = jax.random.uniform(k1, (Cin, Cout, K, K), jnp.float32, -bound, bound)
    w_imag = jax.random.uniform(k2, (Cin, Cout, K, K), jnp.float32, -bound, bound)
    bbound = float(1.0 / np.sqrt(Cout * K * K))
    b_real = jax.random.uniform(k3, (Cout,), jnp.float32, -bbound, bbound)
    b_imag = jax.random.uniform(k4, (Cout,), jnp.float32, -bbound, bbound)

    x = jax.random.normal(k5, (N, Cin, H, W, 2), jnp.float32)

    out = cconv_transpose2d(x, w_real, w_imag, b_real, b_imag,
                            stride, padding, out_padding, use_bf16=False)
    out = jax.block_until_ready(out)

    # Pure-JAX (XLA conv) reference for validation.
    def ref_convt(x_nchw, w, b):
        w_oihw = jnp.transpose(w[:, :, ::-1, ::-1], (1, 0, 2, 3))
        pad = (K - 1 - padding, K - 1 - padding + out_padding)
        y = lax.conv_general_dilated(
            x_nchw, w_oihw, window_strides=(1, 1), padding=[pad, pad],
            lhs_dilation=(stride, stride),
            dimension_numbers=('NCHW', 'OIHW', 'NCHW'))
        return y + b[None, :, None, None]

    xr, xi = x[..., 0], x[..., 1]
    cr = ref_convt(xr, w_real, b_real) - ref_convt(xi, w_imag, b_imag)
    ci = ref_convt(xr, w_imag, b_imag) + ref_convt(xi, w_real, b_real)
    ref = jnp.stack([cr, ci], axis=-1)

    Hout = (H - 1) * stride - 2 * padding + K + out_padding
    assert out.shape == (N, Cout, Hout, Hout, 2), out.shape
    np.testing.assert_allclose(np.asarray(out), np.asarray(ref),
                               rtol=1e-4, atol=1e-4)
    print("KERNEL_OK")
</pallas_src>

<mosaic_0001>
module attributes {stable_mosaic.version = 11 : i64} {
  func.func @kernel(%arg0: i32, %arg1: memref<1x32x256xf32, #tpu.memory_space<vmem>>, %arg2: memref<32x32xf32, #tpu.memory_space<vmem>>, %arg3: memref<32x1xf32, #tpu.memory_space<vmem>>, %arg4: memref<1x32x256xf32, #tpu.memory_space<vmem>>) attributes {dimension_semantics = [#tpu.dimension_semantics<parallel>], iteration_bounds = array<i64: 2>, scalar_prefetch = 0 : i64, scratch_operands = 0 : i64, tpu.core_type = #tpu.core_type<tc>, window_params = [{transform_indices = @transform_0, window_bounds = array<i64: 1, 32, 256>}, {pipeline_mode = #tpu.pipeline_mode<synchronous>, transform_indices = @transform_1, window_bounds = array<i64: 32, 32>}, {pipeline_mode = #tpu.pipeline_mode<synchronous>, transform_indices = @transform_2, window_bounds = array<i64: 32, 1>}, {transform_indices = @transform_3, window_bounds = array<i64: 1, 32, 256>}]} {
    %c0 = arith.constant 0 : index
    %c0_0 = arith.constant 0 : index
    %0 = vector.load %arg2[%c0, %c0_0] : memref<32x32xf32, #tpu.memory_space<vmem>>, vector<32x32xf32>
    %c0_1 = arith.constant 0 : index
    %c0_2 = arith.constant 0 : index
    %c0_3 = arith.constant 0 : index
    %1 = vector.load %arg1[%c0_1, %c0_2, %c0_3] : memref<1x32x256xf32, #tpu.memory_space<vmem>>, vector<1x32x256xf32>
    %2 = vector.shape_cast %1 : vector<1x32x256xf32> to vector<32x256xf32>
    %cst = arith.constant dense<0.000000e+00> : vector<32x256xf32>
    %3 = tpu.matmul %0, %2, %cst {dimension_numbers = #tpu.dot_dimension_numbers<[1], [0], [0], [1], [0, 0, 1, 1], [], []>} : vector<32x32xf32>, vector<32x256xf32>, vector<32x256xf32> -> vector<32x256xf32>
    %c0_4 = arith.constant 0 : index
    %c0_5 = arith.constant 0 : index
    %4 = vector.load %arg3[%c0_4, %c0_5] : memref<32x1xf32, #tpu.memory_space<vmem>>, vector<32x1xf32>
    %5 = vector.broadcast %4 : vector<32x1xf32> to vector<32x256xf32>
    %6 = arith.addf %3, %5 : vector<32x256xf32>
    %c0_6 = arith.constant 0 : index
    %c0_7 = arith.constant 0 : index
    %c0_8 = arith.constant 0 : index
    %7 = vector.load %arg4[%c0_6, %c0_7, %c0_8] : memref<1x32x256xf32, #tpu.memory_space<vmem>>, vector<1x32x256xf32>
    %8 = vector.shape_cast %7 : vector<1x32x256xf32> to vector<32x256xf32>
    %9 = vector.shape_cast %6 : vector<32x256xf32> to vector<1x32x256xf32>
    tpu.vector_store %arg4[%c0_6, %c0_7, %c0_8], %9 {strides = array<i32>} : memref<1x32x256xf32, #tpu.memory_space<vmem>>, vector<1x32x256xf32>,
    return
  }
  func.func @transform_0(%arg0: i32) -> (i32, i32, i32) {
    %c0_i32 = arith.constant 0 : i32
    %c0_i32_0 = arith.constant 0 : i32
    %c0_i32_1 = arith.constant 0 : i32
    return %arg0, %c0_i32, %c0_i32_0 : i32, i32, i32
  }
  func.func @transform_1(%arg0: i32) -> (i32, i32) {
    %c0_i32 = arith.constant 0 : i32
    %c0_i32_0 = arith.constant 0 : i32
    %c0_i32_1 = arith.constant 0 : i32
    return %c0_i32, %c0_i32_0 : i32, i32
  }
  func.func @transform_2(%arg0: i32) -> (i32, i32) {
    %c0_i32 = arith.constant 0 : i32
    %c0_i32_0 = arith.constant 0 : i32
    %c0_i32_1 = arith.constant 0 : i32
    return %c0_i32, %c0_i32_0 : i32, i32
  }
  func.func @transform_3(%arg0: i32) -> (i32, i32, i32) {
    %c0_i32 = arith.constant 0 : i32
    %c0_i32_0 = arith.constant 0 : i32
    %c0_i32_1 = arith.constant 0 : i32
    return %arg0, %c0_i32, %c0_i32_0 : i32, i32, i32
  }
}

</mosaic_0001>

<bundles_post_ra>
// kernel: tpu_custom_call.1
= control target key start
LH: loop header
LB: loop body
LE: loop exit
PB: predicated region body
PF: predicated region fallthrough
CT: control target
= control target key end

     0   :  { %8 = vsyncpa [#allocation3], 0  ;;  %s812_s0 = inlined_call_operand.hbm [shape: f32[2,32,256], index: 0, kind: input, shape index: {}]   ;;  %s813_s1 = inlined_call_operand.vmem [shape: f32[32,32], index: 1, kind: input, shape index: {}]   ;;  %s814_s2 = inlined_call_operand.vmem [shape: f32[32,1], index: 2, kind: input, shape index: {}]   ;;  %s815_s3 = inlined_call_operand.hbm [shape: f32[2,32,256], index: 3, kind: output, shape index: {}]  }
   0x1   :  { %10 = vsyncpa [#allocation3 + $0x1], 0 }
   0x2   :  { %11 = vsyncpa [#allocation4], 0 }
   0x3   :  { %13 = vsyncpa [#allocation4 + $0x1], 0  ;;  %s626_s12 = smov 0   ;;  %s628_s13 = smov 0  }
   0x4   :  { %s630_s14 = smov 0   ;;  %s632_s15 = smov 0  }
   0x5 LB: > { %s647_s16 = sadd.s32 4294967295, %s596_s15   ;;  %s422_s17 = sadd.s32 4294967294, %s596_s15   ;;  %s596_s15 = sphi %s632_s15, %s830_s15   ;;  %s592_s14 = sphi %s630_s14, %s829_s14   ;;  %s588_s13 = sphi %s628_s13, %s828_s13   ;;  %s584_s12 = sphi %s626_s12, %s827_s12  }
   0x6   : > { %s651_s18 = sadd.s32 1, %s596_s15   ;;  %s26_s19 = sadd.s32 1, %s592_s14 }
   0x7   : > { %s23_s20 = ssub.s32 %s596_s15, %s651_s18  ;;  %p33_p0 = scmp.ne.s32.totalorder %s592_s14, %s588_s13 }
   0x8   : > { %p24_p1 = scmp.eq.s32.totalorder %s23_s20, 0  ;;  %p34_p2 = scmp.eq.s32.totalorder %s596_s15, 0 }
   0x9   : > { %p39_p3 = scmp.ne.s32.totalorder %s588_s13, %s584_s12  ;;  %p40_p4 = scmp.eq.s32.totalorder %s647_s16, 0 }
   0xa   : > { %s663_s21 = scalar_select %p24_p1, %s592_s14, %s26_s19  }
   0xb   : > { %p665_p5 = por %p34_p2, %p33_p0  ;;  %p669_p6 = por %p40_p4, %p39_p3 }
   0xc   : > { %p105_p7 = scmp.eq.s32.totalorder %s647_s16, 1  ;;  %p111_p8 = scmp.eq.s32.totalorder %s422_s17, 1 }
   0xd   : > { %s819_s23 = scalar_select %p669_p6, 1, 0 }
   0xe   : > { %p462_p10 = scmp.lt.s32.totalorder %s596_s15, 2  ;;  %p676_p11 = por %p105_p7, %p33_p0 }
   0xf   : > { %p680_p12 = por %p111_p8, %p39_p3  ;;  %s137_s26 = sand.u32 1, %s592_s14  }
  0x10   : > { %s820_s24 = scalar_select %p676_p11, 1, 0 }
  0x11   : > { %s821_s25 = scalar_select %p680_p12, 1, 0 }
  0x12   : > { %s440_s27 = sshll.u32 %s596_s15, 10  ;;  %s425_s28 = sshll.u32 %s137_s26, 6 }
  0x13   : > { %s689_s4 = scalar_lea.hbm %s812_s0, %s440_s27  ;;  %s141_s5 = scalar_lea.vmem [#allocation2], %s425_s28 }
  0x14   : > { %s148_s6 = sshll.u32 %s141_s5, 4  ;;  %p693_p13 = pnand %p462_p10, %p665_p5  ;;  %s697_s6 = int_to_ptr.vmem [resolvable:$true] %s148_s6 }
  0x15   : > { %s699_s8 = scalar_lea.sflag [#allocation3], %s137_s26  ;;  %s504_s9 = scalar_lea.hbm %s689_s4, 1024 }
  0x16   : > { %p505_p0 = scmp.ne.s32.totalorder %s689_s4, %s504_s9  ;;  %p506_p1 = pneg %p693_p13 }
  0x17   : > { %s509_s17 = scalar_lea.hbm %s812_s0, 2048  ;;  %p510_p4 = scmp.lt.s32.totalorder %s689_s4, %s812_s0 }
  0x18   : > { %p507_p2 = pnand %p506_p1, %p505_p0  ;;  %p511_p5 = scmp.lt.s32.totalorder %s509_s17, %s504_s9 }
  0x1a   : > { %p508_p3 = pneg %p507_p2  ;;  %p512_p7 = por %p511_p5, %p510_p4 }
  0x1c   : > { %p513_p8 = pnand %p512_p7, %p508_p3 }
  0x1e   : > { %516 = shalt.err (!%p513_p8)
}
  0x1f   : > { %s517_s22 = scalar_lea.vmem %s697_s6, 1024  ;;  %s598_s26 = smov [#allocation2]  }
  0x20   : > { %p518_p10 = scmp.ne.s32.totalorder %s697_s6, %s517_s22  ;;  %s522_s27 = sshll.u32 %s598_s26, 4  ;;  %s523_s27 = int_to_ptr.vmem [resolvable:$false] %s522_s27 }
  0x21   : > { %s524_s28 = scalar_lea.vmem %s523_s27, 2048  ;;  %p525_p2 = scmp.lt.s32.totalorder %s697_s6, %s523_s27 }
  0x22   : > { %p520_p9 = pnand %p518_p10, %p506_p1  ;;  %p526_p12 = scmp.lt.s32.totalorder %s524_s28, %s517_s22 }
  0x24   : > { %p521_p0 = pneg %p520_p9  ;;  %p527_p11 = por %p526_p12, %p525_p2 }
  0x26   : > { %p528_p6 = pnand %p527_p11, %p521_p0 }
  0x28   : > { %531 = shalt.err (!%p528_p6)
}
  0x29   : > { %s599_s29 = smov 256   ;;  %s600_s30 = smov 16  }
  0x2a   : > { %457 = dma.hbm_to_vmem [thread:$0]  (!%p693_p13), %s689_s4, 1024, %s697_s6, %s699_s8, %s599_s29, %s599_s29, %s600_s30  }
  0x2b   : > { %p428_p9 = scmp.ge.s32.totalorder %s596_s15, 1  ;;  %p156_p1 = scmp.lt.s32.totalorder %s596_s15, 3 }
  0x2d   : > { %p157_p3 = pnand %p428_p9, %p156_p1 }
  0x2e   : > { %s723_s5 = sand.u32 (!%p157_p3), 1, %s588_s13   ;;  %p823_p6 = scmp.ne.s32.totalorder (!%p157_p3), %s819_s23, 0 }
  0x2f   : > { %160 = sbr.rel (%p157_p3) target bundleno = 279 (0x117), region = 32  ;;  %s429_s9 = sshll.u32 (!%p157_p3), %s723_s5, 6 }
  0x30   : > { %s163_s10 = scalar_lea.sflag (!%p157_p3), [#allocation3], %s723_s5  ;;  %s166_s11 = scalar_lea.vmem (!%p157_p3), [#allocation2], %s429_s9 }
  0x34   : > { %575 = dma.done.wait (%p823_p6), %s163_s10, 1024  }
  0x35   : > { %577 = vsyncadd (%p823_p6), %s163_s10, 4294966272  ;;  %v601_v0 = vmov 0.0   ;;  %v602_v1 = vmov 0   ;;  %v200_v2 = vld [vmem:[%s166_s11 + $0x38] sm:$0xff]  ;;  %v199_v3 = vld [vmem:[%s166_s11 + $0x30] sm:$0xff]  ;;  %vm225_vm0 = vcmask 261120  }
  0x36   : > { %302 = vmatprep.mubr.f32.mxu0 %v601_v0  ;;  %314 = vmatprep.mubr.f32.mxu1 %v601_v0  ;;  %v198_v4 = vld [vmem:[%s166_s11 + $0x28] sm:$0xff]  ;;  %v197_v5 = vld [vmem:[%s166_s11 + $0x20] sm:$0xff]  ;;  %v196_v6 = vld [vmem:[%s166_s11 + $0x18] sm:$0xff]  ;;  %s188_s23 = scalar_lea.vmem [#allocation5], %s429_s9  ;;  %s441_s6 = sshll.u32 %s647_s16, 10 }
  0x37   : > { %503 = vset.pattern.permute.xlu1 %v602_v1  ;;  %502 = vset.pattern.permute.xlu0 %v602_v1  ;;  %v195_v7 = vld [vmem:[%s166_s11 + $0x10] sm:$0xff]  ;;  %v194_v8 = vld [vmem:[%s166_s11 + $0x8] sm:$0xff]  ;;  %v193_v9 = vld [vmem:[%s166_s11] sm:$0xff]  ;;  %s349_s4 = sshll.u32 %s188_s23, 4  ;;  %s769_s8 = scalar_lea.hbm %s815_s3, %s441_s6  ;;  %s764_s4 = int_to_ptr.vmem [resolvable:$true] %s349_s4 }
  0x38   : > { %262 = vmatprep.subr.mxu0 %v200_v2  ;;  %442 = vmatprep.subr.mxu1 %v200_v2  ;;  %v189_v10 = vld [vmem:[%s813_s1] sm:$0xff]  ;;  %v191_v11 = vld [vmem:[%s813_s1 + $0x10] sm:$0xff]  ;;  %v190_v14 = vld [vmem:[%s813_s1 + $0x8] sm:$0xff]  ;;  %s336_s16 = scalar_lea.sflag [#allocation4], %s723_s5  ;;  %s532_s17 = scalar_lea.vmem %s764_s4, 1024 }
  0x39   : > { %263 = vmatpush1.msra.mxu0 %v199_v3  ;;  %446 = vmatpush1.msra.mxu1 %v199_v3  ;;  %v203_v12 = vld [vmem:[%s814_s2 + $0x10] sm:$0xff]  ;;  %v201_v13 = vld [vmem:[%s814_s2] sm:$0xff]  ;;  %v192_v15 = vld [vmem:[%s813_s1 + $0x18] sm:$0xff]  ;;  %p533_p11 = scmp.ne.s32.totalorder %s764_s4, %s532_s17  ;;  %p824_p12 = scmp.ne.s32.totalorder %s820_s24, 0 }
  0x3a   : > { %264 = vmatprep.subr.mxu0 %v198_v4  ;;  %443 = vmatprep.subr.mxu1 %v198_v4  ;;  %v204_v16 = vld [vmem:[%s814_s2 + $0x18] sm:$0xff]  ;;  %v202_v17 = vld [vmem:[%s814_s2 + $0x8] sm:$0xff]  ;;  %s603_s19 = smov [#allocation5]  }
  0x3b   : > { %265 = vmatpush1.msra.mxu0 %v197_v5  ;;  %447 = vmatpush1.msra.mxu1 %v197_v5  ;;  %p534_p13 = pnand %p533_p11, %p824_p12  ;;  %s536_s20 = sshll.u32 %s603_s19, 4  ;;  %s537_s20 = int_to_ptr.vmem [resolvable:$false] %s536_s20 }
  0x3c   : > { %266 = vmatprep.subr.mxu0 %v196_v6  ;;  %444 = vmatprep.subr.mxu1 %v196_v6  ;;  %s538_s22 = scalar_lea.vmem %s537_s20, 2048  ;;  %p539_p5 = scmp.lt.s32.totalorder %s764_s4, %s537_s20 }
  0x3d   : > { %267 = vmatpush1.msra.mxu0 %v195_v7  ;;  %448 = vmatpush1.msra.mxu1 %v195_v7  ;;  %p535_p4 = pneg %p534_p13  ;;  %p540_p7 = scmp.lt.s32.totalorder %s538_s22, %s532_s17 }
  0x3e   : > { %268 = vmatprep.subr.mxu0 %v194_v8  ;;  %445 = vmatprep.subr.mxu1 %v194_v8 }
  0x3f   : > { %269 = vmatpush1.msra.mxu0 %v193_v9  ;;  %449 = vmatpush1.msra.mxu1 %v193_v9  ;;  %p541_p8 = por %p540_p7, %p539_p5 }
  0x40   : > { %431 = vmatmul.mubr.msk.f32.vlgmr.msra.gmra.mxu0 %vm225_vm0, %v189_v10  ;;  %433 = vmatmul.mubr.msk.f32.vlgmr.msra.gmra.mxu1 %vm225_vm0, %v191_v11 }
  0x41   : > { %308 = vmatprep.mubr.f32.mxu0 %v601_v0  ;;  %320 = vmatprep.mubr.f32.mxu1 %v601_v0  ;;  %p542_p10 = pnand %p541_p8, %p535_p4 }
  0x42   : > { %217 = vperm.xlu1 %503, %v203_v12   ;;  %207 = vperm.xlu0 %502, %v201_v13  }
  0x44   : > { %432 = vmatmul.mubr.msk.f32.gmra.mxu0 %vm225_vm0, %v190_v14  ;;  %434 = vmatmul.mubr.msk.f32.gmra.mxu1 %vm225_vm0, %v192_v15 }
  0x46   : > { %222 = vperm.xlu1 %503, %v204_v16   ;;  %212 = vperm.xlu0 %502, %v202_v17  }
  0xbd   : > { %v218_v18 = vpop.permute.xlu1 %217  ;;  %v208_v19 = vpop.permute.xlu0 %207 }
  0xc1   : > { %v223_v26 = vpop.permute.xlu1 %222  ;;  %v213_v27 = vpop.permute.xlu0 %212 }
 0x100   : > { %v304_v20 = vpop.f32.mrf.mxu0  ;;  %v316_v21 = vpop.f32.mrf.mxu1 }
 0x101   : > { %v305_v22 = vadd.f32 %v304_v20, %v208_v19  ;;  %v317_v23 = vadd.f32 %v316_v21, %v218_v18 }
 0x102   : > { %v306_v24 = vpop.f32.mrf.mxu0  ;;  %v318_v25 = vpop.f32.mrf.mxu1 }
 0x103   : > { %327 = vst [vmem:[%s188_s23] sm:$0xff] %v305_v22  ;;  %331 = vst [vmem:[%s188_s23 + $0x20] sm:$0xff] %v317_v23  ;;  %v307_v28 = vadd.f32 %v306_v24, %v208_v19  ;;  %v319_v29 = vadd.f32 %v318_v25, %v218_v18 }
 0x104   : > { %v310_v30 = vpop.f32.mrf.mxu0  ;;  %v322_v31 = vpop.f32.mrf.mxu1 }
 0x105   : > { %328 = vst [vmem:[%s188_s23 + $0x8] sm:$0xff] %v307_v28  ;;  %332 = vst [vmem:[%s188_s23 + $0x28] sm:$0xff] %v319_v29  ;;  %v311_v32 = vadd.f32 %v310_v30, %v213_v27  ;;  %v323_v33 = vadd.f32 %v322_v31, %v223_v26 }
 0x106   : > { %v312_v34 = vpop.f32.mrf.mxu0  ;;  %v324_v35 = vpop.f32.mrf.mxu1 }
 0x107   : > { %329 = vst [vmem:[%s188_s23 + $0x10] sm:$0xff] %v311_v32  ;;  %333 = vst [vmem:[%s188_s23 + $0x30] sm:$0xff] %v323_v33  ;;  %v313_v36 = vadd.f32 %v312_v34, %v213_v27  ;;  %v325_v37 = vadd.f32 %v324_v35, %v223_v26 }
 0x109   : > { %330 = vst [vmem:[%s188_s23 + $0x18] sm:$0xff] %v313_v36  ;;  %334 = vst [vmem:[%s188_s23 + $0x38] sm:$0xff] %v325_v37 }
 0x10a   : > { %545 = shalt.err (!%p542_p10)
}
 0x10b   : > { %s546_s26 = scalar_lea.hbm %s769_s8, 1024  ;;  %s550_s29 = scalar_lea.hbm %s815_s3, 2048 }
 0x10c   : > { %p547_p0 = scmp.ne.s32.totalorder %s769_s8, %s546_s26  ;;  %p551_p1 = scmp.lt.s32.totalorder %s769_s8, %s815_s3 }
 0x10d   : > { %p552_p3 = scmp.lt.s32.totalorder %s550_s29, %s546_s26 }
 0x10e   : > { %p548_p2 = pnand %p547_p0, %p824_p12 }
 0x10f   : > { %p553_p6 = por %p552_p3, %p551_p1 }
 0x110   : > { %p549_p9 = pneg %p548_p2 }
 0x112   : > { %p554_p11 = pnand %p553_p6, %p549_p9 }
 0x114   : > { %557 = shalt.err (!%p554_p11)
}
 0x115   : > { %s604_s11 = smov 256   ;;  %s605_s23 = smov 16  }
 0x116   : > { %452 = dma.vmem_to_hbm [thread:$0]  (%p824_p12), %s764_s4, 1024, %s769_s8, %s336_s16, %s604_s11, %s604_s11, %s605_s23  }
 0x117 PF: > { %s364_s6 = sand.u32 1, %s584_s12   ;;  %p825_p13 = scmp.ne.s32.totalorder %s821_s25, 0 }
 0x118   : > { %p826_p4 = scmp.ge.s32.totalorder %s596_s15, 2  ;;  %s365_s9 = scalar_lea.sflag [#allocation4], %s364_s6 }
 0x11a   : > { %p459_p5 = pnand %p826_p4, %p825_p13 }
 0x11c   : > { %p460_p7 = pneg %p459_p5 }
 0x11e   : > { %579 = dma.done.wait (%p460_p7), %s365_s9, 1024  }
 0x11f   : > { %581 = vsyncadd (%p460_p7), %s365_s9, 4294966272  ;;  %p16_p8 = scmp.ge.s32.totalorder %s651_s18, 4   ;;  %s827_s12 = smov %s588_s13 }
 0x120   : > { %s828_s13 = smov %s592_s14  ;;  %s829_s14 = smov %s663_s21 }
 0x121   : > { %s830_s15 = smov %s651_s18  ;;  %18 = sbr.rel (!%p16_p8) target bundleno = 5 (0x5), region = 77 }
 0x126   :  { %370 = vsyncpa [#allocation3], 1 }
 0x127   :  { %372 = vsyncpa [#allocation3 + $0x1], 1 }
 0x128   :  { %373 = vsyncpa [#allocation4], 1 }
 0x129   :  { %375 = vsyncpa [#allocation4 + $0x1], 1 }

</bundles_post_ra>
